<compile_context>
chip_gen: v6e
topology: v6e:2x2x1
jax: 0.10.0
libtpu: 0.0.40
codegen_flags: <defaults>
</compile_context>

<pallas_src>
import jax
import jax.numpy as jnp
from jax.experimental import pallas as pl
from jax.experimental.pallas import tpu as pltpu


# ---------------------------------------------------------------------------
# Pallas kernel: fused (x @ W_h + b_h) -> softmax, accumulated over K tiles.
# ---------------------------------------------------------------------------
def _linear_softmax_kernel(x_ref, w_ref, b_ref, o_ref):
    k = pl.program_id(2)

    # First K step: initialize the resident output block with the bias.
    @pl.when(k == 0)
    def _():
        o_ref[0] = jnp.broadcast_to(b_ref[0], o_ref.shape[1:])

    # MXU matmul (bf16 inputs, f32 accumulation) straight into the output block.
    o_ref[0] += jnp.dot(x_ref[...], w_ref[0],
                        preferred_element_type=jnp.float32)

    # Last K step: fused, numerically-stable softmax over the lane (class) axis.
    @pl.when(k == pl.num_programs(2) - 1)
    def _():
        z = o_ref[0]
        z = z - jnp.max(z, axis=-1, keepdims=True)
        e = jnp.exp(z)
        o_ref[0] = e / jnp.sum(e, axis=-1, keepdims=True)


# ---------------------------------------------------------------------------
# Wrapper
# ---------------------------------------------------------------------------
def _pick_tile(n, candidates):
    """Largest candidate that divides n exactly, else the full extent."""
    for c in candidates:
        if n % c == 0:
            return c
    return n


def multi_head_linear_softmax(x, w_stack, b_stack):
    """x: (N, K) f32; w_stack: (H, K, O); b_stack: (H, O).  Returns (H, N, O) f32."""
    N, K = x.shape
    H, K2, O = w_stack.shape
    assert K2 == K

    # Tile sizes: as large as divides the problem (keeps (8,128) layout rules;
    # tm==N / tk==K fall back to "full dim", which is always legal).
    tm = _pick_tile(N, (512, 256, 128, 64, 32, 16, 8))
    tk = _pick_tile(K, (2048, 1024, 512, 256, 128))
    n_m = N // tm
    n_k = K // tk

    xb = x.astype(jnp.bfloat16)                       # halve HBM/VMEM traffic for A
    wb = w_stack.astype(jnp.bfloat16)                 # bf16 MXU weights
    bb = b_stack.reshape(H, 1, O).astype(jnp.float32) # bias stays f32

    return pl.pallas_call(
        _linear_softmax_kernel,
        out_shape=jax.ShapeDtypeStruct((H, N, O), jnp.float32),
        grid_spec=pltpu.PrefetchScalarGridSpec(
            num_scalar_prefetch=0,
            grid=(H, n_m, n_k),
            in_specs=[
                pl.BlockSpec((tm, tk), lambda h, i, k: (i, k)),       # activations
                pl.BlockSpec((1, tk, O), lambda h, i, k: (h, k, 0)),  # per-head weights
                pl.BlockSpec((1, 1, O), lambda h, i, k: (h, 0, 0)),   # per-head bias
            ],
            out_specs=pl.BlockSpec((1, tm, O), lambda h, i, k: (h, i, 0)),
        ),
        compiler_params=pltpu.CompilerParams(
            dimension_semantics=("parallel", "parallel", "arbitrary"),
        ),
    )(xb, wb, bb)


@jax.jit
def mnist_head_forward(x, w_stack, b_stack):
    """Matches mnist_head.forward: returns a list of H softmax outputs (N, O)."""
    out = multi_head_linear_softmax(x, w_stack, b_stack)
    return [out[h] for h in range(w_stack.shape[0])]


# ---------------------------------------------------------------------------
# Deterministic PyTorch-style init: Linear weight/bias ~ U(-1/sqrt(K), 1/sqrt(K)).
# ---------------------------------------------------------------------------
def init_params(key, input_dim, output_dim, sub_heads):
    params = []
    bound = 1.0 / float(input_dim) ** 0.5
    for i in range(sub_heads):
        kw, kb = jax.random.split(jax.random.fold_in(key, i))
        w = jax.random.uniform(kw, (output_dim, input_dim), jnp.float32, -bound, bound)
        b = jax.random.uniform(kb, (output_dim,), jnp.float32, -bound, bound)
        params.append((w, b))
    return params


if __name__ == "__main__":
    key = jax.random.PRNGKey(0)
    N, input_dim, output_dim, sub_heads = 8, 128, 10, 5

    x = jax.random.normal(jax.random.fold_in(key, 999), (N, input_dim), jnp.float32)
    params = init_params(key, input_dim, output_dim, sub_heads)

    # Stack per-head parameters: W_h is (O, K) in PyTorch; kernel wants (K, O).
    w_stack = jnp.stack([w.T for (w, b) in params])   # (H, K, O)
    b_stack = jnp.stack([b for (w, b) in params])     # (H, O)

    outs = mnist_head_forward(x, w_stack, b_stack)
    jax.block_until_ready(outs)

    # Reference (same bf16-cast inputs, f32 math) for a correctness check.
    xr = x.astype(jnp.bfloat16).astype(jnp.float32)
    wr = w_stack.astype(jnp.bfloat16).astype(jnp.float32)
    logits = jnp.einsum("nk,hko->hno", xr, wr) + b_stack[:, None, :]
    ref = jax.nn.softmax(logits, axis=-1)

    assert len(outs) == sub_heads
    for h, o in enumerate(outs):
        assert o.shape == (N, output_dim) and o.dtype == jnp.float32
        assert bool(jnp.allclose(jnp.sum(o, axis=-1), 1.0, atol=1e-4))
        assert float(jnp.max(jnp.abs(o - ref[h]))) < 2e-3

    print("KERNEL_OK")
</pallas_src>

<mosaic_0001>
module attributes {stable_mosaic.version = 11 : i64} {
  func.func @_linear_softmax_kernel(%arg0: i32, %arg1: i32, %arg2: i32, %arg3: memref<8x128xbf16, #tpu.memory_space<vmem>>, %arg4: memref<1x128x10xbf16, #tpu.memory_space<vmem>>, %arg5: memref<1x1x10xf32, #tpu.memory_space<vmem>>, %arg6: memref<1x8x10xf32, #tpu.memory_space<vmem>>) attributes {dimension_semantics = [#tpu.dimension_semantics<parallel>, #tpu.dimension_semantics<parallel>, #tpu.dimension_semantics<arbitrary>], iteration_bounds = array<i64: 5, 1, 1>, scalar_prefetch = 0 : i64, scratch_operands = 0 : i64, tpu.core_type = #tpu.core_type<tc>, window_params = [{transform_indices = @transform_0, window_bounds = array<i64: 8, 128>}, {transform_indices = @transform_1, window_bounds = array<i64: 1, 128, 10>}, {transform_indices = @transform_2, window_bounds = array<i64: 1, 1, 10>}, {transform_indices = @transform_3, window_bounds = array<i64: 1, 8, 10>}]} {
    %c0_i32 = arith.constant 0 : i32
    %0 = arith.cmpi eq, %arg2, %c0_i32 : i32
    %1 = arith.extui %0 : i1 to i32
    %c0_i32_0 = arith.constant 0 : i32
    %2 = arith.cmpi ne, %1, %c0_i32_0 : i32
    scf.if %2 {
      %c0_13 = arith.constant 0 : index
      %c0_14 = arith.constant 0 : index
      %c0_15 = arith.constant 0 : index
      %16 = vector.load %arg5[%c0_13, %c0_14, %c0_15] : memref<1x1x10xf32, #tpu.memory_space<vmem>>, vector<1x1x10xf32>
      %17 = vector.shape_cast %16 : vector<1x1x10xf32> to vector<1x10xf32>
      %18 = vector.shape_cast %17 : vector<1x10xf32> to vector<1x10xf32>
      %19 = vector.broadcast %18 : vector<1x10xf32> to vector<8x10xf32>
      %c0_16 = arith.constant 0 : index
      %c0_17 = arith.constant 0 : index
      %c0_18 = arith.constant 0 : index
      %20 = vector.load %arg6[%c0_16, %c0_17, %c0_18] : memref<1x8x10xf32, #tpu.memory_space<vmem>>, vector<1x8x10xf32>
      %21 = vector.shape_cast %20 : vector<1x8x10xf32> to vector<8x10xf32>
      %22 = vector.shape_cast %19 : vector<8x10xf32> to vector<1x8x10xf32>
      tpu.vector_store %arg6[%c0_16, %c0_17, %c0_18], %22 {strides = array<i32>} : memref<1x8x10xf32, #tpu.memory_space<vmem>>, vector<1x8x10xf32>,
    } else {
    }
    %c0 = arith.constant 0 : index
    %c0_1 = arith.constant 0 : index
    %c0_2 = arith.constant 0 : index
    %3 = vector.load %arg6[%c0, %c0_1, %c0_2] : memref<1x8x10xf32, #tpu.memory_space<vmem>>, vector<1x8x10xf32>
    %4 = vector.shape_cast %3 : vector<1x8x10xf32> to vector<8x10xf32>
    %c0_3 = arith.constant 0 : index
    %c0_4 = arith.constant 0 : index
    %5 = vector.load %arg3[%c0_3, %c0_4] : memref<8x128xbf16, #tpu.memory_space<vmem>>, vector<8x128xbf16>
    %c0_5 = arith.constant 0 : index
    %c0_6 = arith.constant 0 : index
    %c0_7 = arith.constant 0 : index
    %6 = vector.load %arg4[%c0_5, %c0_6, %c0_7] : memref<1x128x10xbf16, #tpu.memory_space<vmem>>, vector<1x128x10xbf16>
    %7 = vector.shape_cast %6 : vector<1x128x10xbf16> to vector<128x10xbf16>
    %cst = arith.constant dense<0.000000e+00> : vector<8x10xf32>
    %8 = tpu.matmul %5, %7, %cst {dimension_numbers = #tpu.dot_dimension_numbers<[1], [0], [0], [1], [0, 0, 1, 1], [], []>} : vector<8x128xbf16>, vector<128x10xbf16>, vector<8x10xf32> -> vector<8x10xf32>
    %9 = arith.addf %4, %8 : vector<8x10xf32>
    %c0_8 = arith.constant 0 : index
    %c0_9 = arith.constant 0 : index
    %c0_10 = arith.constant 0 : index
    %10 = vector.load %arg6[%c0_8, %c0_9, %c0_10] : memref<1x8x10xf32, #tpu.memory_space<vmem>>, vector<1x8x10xf32>
    %11 = vector.shape_cast %10 : vector<1x8x10xf32> to vector<8x10xf32>
    %12 = vector.shape_cast %9 : vector<8x10xf32> to vector<1x8x10xf32>
    tpu.vector_store %arg6[%c0_8, %c0_9, %c0_10], %12 {strides = array<i32>} : memref<1x8x10xf32, #tpu.memory_space<vmem>>, vector<1x8x10xf32>,
    %c0_i32_11 = arith.constant 0 : i32
    %13 = arith.cmpi eq, %arg2, %c0_i32_11 : i32
    %14 = arith.extui %13 : i1 to i32
    %c0_i32_12 = arith.constant 0 : i32
    %15 = arith.cmpi ne, %14, %c0_i32_12 : i32
    scf.if %15 {
      %c0_13 = arith.constant 0 : index
      %c0_14 = arith.constant 0 : index
      %c0_15 = arith.constant 0 : index
      %16 = vector.load %arg6[%c0_13, %c0_14, %c0_15] : memref<1x8x10xf32, #tpu.memory_space<vmem>>, vector<1x8x10xf32>
      %17 = vector.shape_cast %16 : vector<1x8x10xf32> to vector<8x10xf32>
      %cst_16 = arith.constant dense<0xFF800000> : vector<8xf32>
      %18 = vector.multi_reduction <maximumf>, %17, %cst_16 [1] : vector<8x10xf32> to vector<8xf32>
      %19 = vector.shape_cast %18 : vector<8xf32> to vector<8x1xf32>
      %20 = vector.broadcast %19 : vector<8x1xf32> to vector<8x10xf32>
      %21 = arith.subf %17, %20 : vector<8x10xf32>
      %22 = math.exp %21 : vector<8x10xf32>
      %cst_17 = arith.constant dense<0.000000e+00> : vector<8xf32>
      %23 = vector.multi_reduction <add>, %22, %cst_17 [1] : vector<8x10xf32> to vector<8xf32>
      %24 = vector.shape_cast %23 : vector<8xf32> to vector<8x1xf32>
      %25 = vector.broadcast %24 : vector<8x1xf32> to vector<8x10xf32>
      %26 = arith.divf %22, %25 : vector<8x10xf32>
      %c0_18 = arith.constant 0 : index
      %c0_19 = arith.constant 0 : index
      %c0_20 = arith.constant 0 : index
      %27 = vector.load %arg6[%c0_18, %c0_19, %c0_20] : memref<1x8x10xf32, #tpu.memory_space<vmem>>, vector<1x8x10xf32>
      %28 = vector.shape_cast %27 : vector<1x8x10xf32> to vector<8x10xf32>
      %29 = vector.shape_cast %26 : vector<8x10xf32> to vector<1x8x10xf32>
      tpu.vector_store %arg6[%c0_18, %c0_19, %c0_20], %29 {strides = array<i32>} : memref<1x8x10xf32, #tpu.memory_space<vmem>>, vector<1x8x10xf32>,
    } else {
    }
    return
  }
  func.func @transform_0(%arg0: i32, %arg1: i32, %arg2: i32) -> (i32, i32) {
    %c0_i32 = arith.constant 0 : i32
    return %arg1, %arg2 : i32, i32
  }
  func.func @transform_1(%arg0: i32, %arg1: i32, %arg2: i32) -> (i32, i32, i32) {
    %c0_i32 = arith.constant 0 : i32
    %c0_i32_0 = arith.constant 0 : i32
    return %arg0, %arg2, %c0_i32 : i32, i32, i32
  }
  func.func @transform_2(%arg0: i32, %arg1: i32, %arg2: i32) -> (i32, i32, i32) {
    %c0_i32 = arith.constant 0 : i32
    %c0_i32_0 = arith.constant 0 : i32
    %c0_i32_1 = arith.constant 0 : i32
    return %arg0, %c0_i32, %c0_i32_0 : i32, i32, i32
  }
  func.func @transform_3(%arg0: i32, %arg1: i32, %arg2: i32) -> (i32, i32, i32) {
    %c0_i32 = arith.constant 0 : i32
    %c0_i32_0 = arith.constant 0 : i32
    return %arg0, %arg1, %c0_i32 : i32, i32, i32
  }
}

</mosaic_0001>

<bundles_post_ra>
// kernel: mnist_head_forward.1
= control target key start
LH: loop header
LB: loop body
LE: loop exit
PB: predicated region body
PF: predicated region fallthrough
CT: control target
= control target key end

     0   :  { %s635_s12 = smov 0   ;;  %s637_s13 = smov 0   ;;  %s686_s0 = inlined_call_operand.vmem [shape: bf16[8,128], index: 0, kind: input, shape index: {}]   ;;  %s687_s1 = inlined_call_operand.vmem [shape: bf16[5,128,10], index: 1, kind: input, shape index: {}]   ;;  %s688_s2 = inlined_call_operand.vmem [shape: f32[5,1,10], index: 2, kind: input, shape index: {}]   ;;  %s689_s3 = inlined_call_operand.vmem [shape: f32[5,8,10], index: 3, kind: output, shape index: {}]  }
   0x1   :  { %s639_s14 = smov 0  }
   0x2 LB: > { %s32_s15 = sadd.s32 1, %s607_s13  ;;  %p506_p0 = scmp.ge.s32.totalorder %s611_s14, 1  ;;  %s611_s14 = sphi %s639_s14, %s13_s14   ;;  %s607_s13 = sphi %s637_s13, %s691_s13   ;;  %s603_s12 = sphi %s635_s12, %s690_s12  }
   0x3   : > { %p34_p1 = scmp.ge.s32.totalorder %s32_s15, 5  ;;  %p187_p2 = scmp.lt.s32.totalorder %s611_s14, 6 }
   0x5   : > { %s693_s15 = smov (%p34_p1, %s32_s15), 0  ;;  %p188_p3 = pnand %p506_p0, %p187_p2 }
   0x6   : > { %p235_p4 = scmp.lt.s32.totalorder (!%p188_p3), %s603_s12, 4 }
   0x7   : > { %191 = sbr.rel (%p188_p3) target bundleno = 563 (0x233), region = 32 }
   0xc   : > { %v613_v0 = vmov 0.0   ;;  %vm614_vm0 = vmmov 0   ;;  %s695_s12 = smov (!%p235_p4, %s603_s12), 4  ;;  %vm266_vm1 = vcmask 80896   ;;  %v269_v10 = vld [vmem:[%s686_s0] sm:$0xf] }
   0xd   : > { %531 = vmatprep.subr.bf16.mxu0 %v613_v0  ;;  %547 = vmatprep.mubr.msk.bf16.mxu0 %vm614_vm0, %v613_v0  ;;  %s521_s16 = sshll.u32 %s695_s12, 6  ;;  %s246_s19 = scalar_lea.vmem %s688_s2, %s695_s12 }
   0xe   : > { %s242_s22 = scalar_lea.vmem %s687_s1, %s521_s16  ;;  %s509_s23 = sshll.u32 %s695_s12, 3  ;;  %v510_v1 = vld [vmem:[%s246_s19] ss:$0 sm:$0xff] }
   0xf   : > { %v577_v2 = vld [vmem:[%s242_s22 + $0x38] sm:$0xff]   ;;  %s662_s26 = scalar_lea.vmem %s689_s3, %s509_s23  ;;  %v578_v3 = vld [vmem:[%s242_s22 + $0x30] sm:$0xff]   ;;  %v579_v4 = vld [vmem:[%s242_s22 + $0x28] sm:$0xff]  }
  0x10   : > { %267 = vst.msk [vmem:[%s662_s26] sm:$0xff] %vm266_vm1, %v510_v1  ;;  %532 = vmatpush3.bf16.msra.mxu0 %v577_v2  ;;  %v580_v5 = vld [vmem:[%s242_s22 + $0x20] sm:$0xff]   ;;  %v581_v6 = vld [vmem:[%s242_s22 + $0x18] sm:$0xff]   ;;  %v582_v7 = vld [vmem:[%s242_s22 + $0x10] sm:$0xff]  }
  0x11   : > { %533 = vmatprep.subr.bf16.mxu0 %v613_v0  ;;  %v583_v8 = vld [vmem:[%s242_s22 + $0x8] sm:$0xff]   ;;  %v584_v9 = vld [vmem:[%s242_s22] sm:$0xff]  }
  0x14   : > { %534 = vmatpush3.bf16.msra.mxu0 %v578_v3 }
  0x15   : > { %535 = vmatprep.subr.bf16.mxu0 %v613_v0 }
  0x17   : > { %v268_v11 = vld [vmem:[%s662_s26] sm:$0xff] }
  0x18   : > { %536 = vmatpush3.bf16.msra.mxu0 %v579_v4 }
  0x19   : > { %537 = vmatprep.subr.bf16.mxu0 %v613_v0 }
  0x1c   : > { %538 = vmatpush3.bf16.msra.mxu0 %v580_v5 }
  0x1d   : > { %539 = vmatprep.subr.bf16.mxu0 %v613_v0 }
  0x20   : > { %540 = vmatpush3.bf16.msra.mxu0 %v581_v6 }
  0x21   : > { %541 = vmatprep.subr.bf16.mxu0 %v613_v0 }
  0x24   : > { %542 = vmatpush3.bf16.msra.mxu0 %v582_v7 }
  0x25   : > { %543 = vmatprep.subr.bf16.mxu0 %v613_v0 }
  0x28   : > { %544 = vmatpush3.bf16.msra.mxu0 %v583_v8 }
  0x29   : > { %545 = vmatprep.subr.bf16.mxu0 %v613_v0 }
  0x2c   : > { %546 = vmatpush3.bf16.msra.mxu0 %v584_v9 }
  0x2f   : > { %548 = vmatmul.mubr.bf16.vlgmr.msra.gmra.mxu0 %v269_v10 }
  0xef   : > { %v368_v12 = vpop.f32.mrf.mxu0 }
  0xf0   : > { %v374_v13 = vadd.f32 %v368_v12, %v268_v11 }
  0xf1   : > { %v549_v14 = vpop.f32.mrf.mxu0 }
  0xf2   : > { %376 = vst.msk [vmem:[%s662_s26] sm:$0xff] %vm266_vm1, %v374_v13 }
  0xf3   : > { %v371_v15 = vpop.f32.mrf.mxu0 }
  0xf5   : > { %v550_v16 = vpop.f32.mrf.mxu0 }
  0xf9   : > { %v380_v17 = vld [vmem:[%s662_s26] sm:$0xff] }
  0xfa   : > { %v381_v18 = vsel %vm266_vm1, %v380_v17, -inf }
  0xfb   : > { %382 = vmax.xlane.f32.xlu0 %v381_v18 }
 0x184   : > { %v383_v19 = vpop.xlane.xlu0 %382 }
 0x185   : > { %v384_v20 = vsub.f32 %v380_v17, %v383_v19 }
 0x187   : > { %v385_v21 = vmul.f32 1.442695, %v384_v20 }
 0x189   : > { %585 = vpow2.f32 %v385_v21 }
 0x196   : > { %v586_v22 = vpop.eup %585 }
 0x197   : > { %v387_v23 = vsel %vm266_vm1, %v586_v22, 0.0 }
 0x198   : > { %388 = vadd.xlane.f32.xlu0 %v387_v23 }
 0x221   : > { %v389_v24 = vpop.xlane.xlu0 %388 }
 0x222   : > { %587 = vrcp.f32 %v389_v24 }
 0x22f   : > { %v588_v25 = vpop.eup %587 }
 0x230   : > { %v391_v26 = vmul.f32 %v588_v25, %v586_v22 }
 0x232   : > { %392 = vst.msk [vmem:[%s662_s26] sm:$0xff] %vm266_vm1, %v391_v26 }
 0x233 PF: > { %s13_s14 = sadd.s32 1, %s611_s14   ;;  %s690_s12 = smov %s607_s13 }
 0x234   : > { %p10_p5 = scmp.ge.s32.totalorder %s13_s14, 7   ;;  %s691_s13 = smov %s693_s15 }
 0x236   :  { %12 = sbr.rel (!%p10_p5) target bundleno = 2 (0x2), region = 76 }

</bundles_post_ra>
